<compile_context>
chip_gen: v5e
topology: v5e:2x2
jax: 0.10.0
libtpu: 0.0.40
codegen_flags: <defaults>
</compile_context>

<pallas_src>
import jax
import jax.numpy as jnp
from jax import lax
from jax.experimental import pallas as pl
from jax.experimental.pallas import tpu as pltpu


def se_block_kernel(x_ref, w1_ref, b1_ref, w2_ref, b2_ref, ones_ref, o_ref):
    bt = x_ref.shape[0]                 # static batch-tile size
    w1 = w1_ref[...]                    # (hidden, C)  torch-native (out, in), pre-scaled by 1/HW
    b1 = b1_ref[...]                    # (hidden, 1)
    w2 = w2_ref[...]                    # (C, hidden)  torch-native (out, in)
    b2 = b2_ref[...]                    # (C, 1)
    ones_col = ones_ref[...]            # (HWb, 1) ones in x.dtype (padded lanes of x are 0)

    def body(b, carry):
        # ---- global average pool on the MXU: sum over lanes; 1/HW lives in w1 ----
        pooled = jnp.dot(x_ref[b], ones_col,
                         preferred_element_type=jnp.float32)              # (C, 1)
        # ---- squeeze: Linear(C -> hidden) + ReLU, column form ----
        h = jnp.dot(w1, pooled, preferred_element_type=jnp.float32) + b1   # (hidden, 1)
        h = jnp.maximum(h, 0.0)
        # ---- excite: Linear(hidden -> C) + Sigmoid, column form ----
        s = jnp.dot(w2, h, preferred_element_type=jnp.float32) + b2        # (C, 1)
        s = jax.nn.sigmoid(s)
        # ---- scale: re-read the tile (cheap vld) rather than keeping it live ----
        o_ref[b] = (x_ref[b] * s.astype(x_ref.dtype)).astype(o_ref.dtype)
        return carry

    lax.fori_loop(0, bt, body, None, unroll=True)


def _vmem_budget():
    """Generation-aware (max x-block bytes, vmem_limit cap)."""
    try:
        cap = int(pltpu.get_tpu_info().vmem_capacity_bytes)
    except Exception:
        cap = 64 << 20                       # conservative: v7x per-TC VMEM
    if cap >= (96 << 20):                    # v5e / v6e: 128 MiB VMEM
        return 12 << 20, 80 << 20
    # v7x: 64 MiB per TC -> smaller blocks, leave headroom for double-buffering
    return 6 << 20, 52 << 20


def _choose_block_b(B, C, HWb, itemsize, max_block_bytes, *, max_block_b=16):
    """Largest divisor of B such that the x block fits the VMEM budget, the
    unrolled loop stays bounded, and the grid keeps >= min(4, B) steps so both
    v7x TensorCores are used and the pipeline stays double-buffered."""
    per_batch = C * HWb * itemsize
    min_steps = min(4, B)
    best = 1
    for d in range(1, B + 1):
        if B % d:
            continue
        if d > max_block_b or d * per_batch > max_block_bytes:
            continue
        if (B // d) < min_steps:
            continue
        best = d
    return best


def se_block(x, w1, b1, w2, b2):
    """x: (B, C, H, W). Weights in torch-native (out_features, in_features) layout:
    w1: (hidden, C), b1: (hidden,), w2: (C, hidden), b2: (C,)."""
    B, C, H, W = x.shape
    hidden = w1.shape[0]
    HW = H * W

    # Only pad tiny spatial dims; a ragged last dim equal to the full array dim
    # is legal and avoids two extra full HBM passes (pad + slice).
    if HW < 128:
        HWb = 128
        x_flat = jnp.pad(x.reshape(B, C, HW), ((0, 0), (0, 0), (0, HWb - HW)))
    else:
        HWb = HW
        x_flat = x.reshape(B, C, HW)

    itemsize = jnp.dtype(x.dtype).itemsize
    max_block_bytes, limit_cap = _vmem_budget()
    bt = _choose_block_b(B, C, HWb, itemsize, max_block_bytes)
    grid = (B // bt,)
    # TODO(synk): add a C/HW tiling fallback when a single-batch (C, HW) block
    # alone exceeds the per-generation VMEM budget (very large feature maps).

    # 1/HW folded into w1 (exact: pooled_sum * (w1/HW) == mean @ w1); ones column
    # in x.dtype so the MXU consumes x with no full-tile cast.
    w1_scaled = w1.astype(jnp.float32) * (1.0 / HW)
    b1_col = b1.reshape(hidden, 1).astype(jnp.float32)
    w2_f32 = w2.astype(jnp.float32)
    b2_col = b2.reshape(C, 1).astype(jnp.float32)
    ones_col = jnp.ones((HWb, 1), dtype=x.dtype)

    block_bytes = bt * C * HWb * itemsize
    w_bytes = (hidden * C + C * hidden + hidden + C) * 4 + HWb * itemsize
    # 2 (double-buffer) x 2 (in + out) x block + weights + headroom, per-gen cap.
    vmem_limit = int(min(limit_cap, max(32 << 20, 4 * block_bytes + w_bytes + (4 << 20))))

    cost = pl.CostEstimate(
        flops=2 * B * C * HW              # pooling matvec
              + 4 * B * C * hidden        # squeeze + excite
              + B * C * HW,               # final scale
        transcendentals=B * C,            # sigmoid
        bytes_accessed=2 * B * C * HWb * itemsize,
    )

    out_flat = pl.pallas_call(
        se_block_kernel,
        out_shape=jax.ShapeDtypeStruct((B, C, HWb), x.dtype),
        grid_spec=pltpu.PrefetchScalarGridSpec(
            num_scalar_prefetch=0,
            grid=grid,
            in_specs=[
                pl.BlockSpec((bt, C, HWb), lambda i: (i, 0, 0)),   # x batch tile
                pl.BlockSpec((hidden, C), lambda i: (0, 0)),       # w1 * (1/HW)
                pl.BlockSpec((hidden, 1), lambda i: (0, 0)),       # b1 column
                pl.BlockSpec((C, hidden), lambda i: (0, 0)),       # w2
                pl.BlockSpec((C, 1), lambda i: (0, 0)),            # b2 column
                pl.BlockSpec((HWb, 1), lambda i: (0, 0)),          # ones pooling column
            ],
            out_specs=pl.BlockSpec((bt, C, HWb), lambda i: (i, 0, 0)),
        ),
        compiler_params=pltpu.CompilerParams(
            dimension_semantics=("parallel",),
            vmem_limit_bytes=vmem_limit,
        ),
        cost_estimate=cost,
    )(x_flat, w1_scaled, b1_col, w2_f32, b2_col, ones_col)

    if HWb != HW:
        out_flat = out_flat[:, :, :HW]
    return out_flat.reshape(B, C, H, W)


def se_block_ref(x, w1, b1, w2, b2):
    # Weights in torch-native (out, in) layout -> y = x @ W.T + b.
    pooled = jnp.mean(x, axis=(2, 3))                    # (B, C)
    h = jnp.maximum(pooled @ w1.T + b1, 0.0)             # (B, hidden)
    s = jax.nn.sigmoid(h @ w2.T + b2)                    # (B, C)
    return x * s[:, :, None, None]


if __name__ == "__main__":
    # SEBlock(inplanes=64, r=16) -> hidden = 64 // 16 = 4
    B, C, r = 2, 64, 16
    hidden = C // r

    key = jax.random.PRNGKey(0)
    kx, kw1, kb1, kw2, kb2, kx2, kx3 = jax.random.split(key, 7)

    # torch-native (out_features, in_features) weight layouts.
    w1 = jax.random.normal(kw1, (hidden, C), dtype=jnp.float32) * 0.1
    b1 = jax.random.normal(kb1, (hidden,), dtype=jnp.float32) * 0.1
    w2 = jax.random.normal(kw2, (C, hidden), dtype=jnp.float32) * 0.1
    b2 = jax.random.normal(kb2, (C,), dtype=jnp.float32) * 0.1

    # Case 1: lane-dense spatial dim (16*16 = 256).
    H = W = 16
    x = jax.random.normal(kx, (B, C, H, W), dtype=jnp.float32)
    out = jax.block_until_ready(se_block(x, w1, b1, w2, b2))
    ref = se_block_ref(x, w1, b1, w2, b2)
    assert out.shape == (B, C, H, W)
    assert jnp.allclose(out, ref, atol=1e-5, rtol=1e-5), "mismatch vs reference (HW=256)"

    # Case 2: tiny spatial dim (10*10 = 100) exercises the (HW < 128) padding path.
    H2 = W2 = 10
    x2 = jax.random.normal(kx2, (B, C, H2, W2), dtype=jnp.float32)
    out2 = jax.block_until_ready(se_block(x2, w1, b1, w2, b2))
    ref2 = se_block_ref(x2, w1, b1, w2, b2)
    assert out2.shape == (B, C, H2, W2)
    assert jnp.allclose(out2, ref2, atol=1e-5, rtol=1e-5), "mismatch vs reference (HW=100)"

    # Case 3: ragged spatial dim >= 128 (13*13 = 169) exercises the no-pad path.
    H3 = W3 = 13
    x3 = jax.random.normal(kx3, (B, C, H3, W3), dtype=jnp.float32)
    out3 = jax.block_until_ready(se_block(x3, w1, b1, w2, b2))
    ref3 = se_block_ref(x3, w1, b1, w2, b2)
    assert out3.shape == (B, C, H3, W3)
    assert jnp.allclose(out3, ref3, atol=1e-5, rtol=1e-5), "mismatch vs reference (HW=169)"

    print("KERNEL_OK")
</pallas_src>

<mosaic_0001>
module attributes {stable_mosaic.version = 11 : i64} {
  func.func @se_block_kernel(%arg0: i32, %arg1: memref<1x64x256xf32, #tpu.memory_space<vmem>>, %arg2: memref<4x64xf32, #tpu.memory_space<vmem>>, %arg3: memref<4x1xf32, #tpu.memory_space<vmem>>, %arg4: memref<64x4xf32, #tpu.memory_space<vmem>>, %arg5: memref<64x1xf32, #tpu.memory_space<vmem>>, %arg6: memref<256x1xf32, #tpu.memory_space<vmem>>, %arg7: memref<1x64x256xf32, #tpu.memory_space<vmem>>) attributes {dimension_semantics = [#tpu.dimension_semantics<parallel>], iteration_bounds = array<i64: 2>, scalar_prefetch = 0 : i64, scratch_operands = 0 : i64, tpu.core_type = #tpu.core_type<tc>, window_params = [{transform_indices = @transform_0, window_bounds = array<i64: 1, 64, 256>}, {pipeline_mode = #tpu.pipeline_mode<synchronous>, transform_indices = @transform_1, window_bounds = array<i64: 4, 64>}, {pipeline_mode = #tpu.pipeline_mode<synchronous>, transform_indices = @transform_2, window_bounds = array<i64: 4, 1>}, {pipeline_mode = #tpu.pipeline_mode<synchronous>, transform_indices = @transform_3, window_bounds = array<i64: 64, 4>}, {pipeline_mode = #tpu.pipeline_mode<synchronous>, transform_indices = @transform_4, window_bounds = array<i64: 64, 1>}, {pipeline_mode = #tpu.pipeline_mode<synchronous>, transform_indices = @transform_5, window_bounds = array<i64: 256, 1>}, {transform_indices = @transform_6, window_bounds = array<i64: 1, 64, 256>}]} {
    %c0 = arith.constant 0 : index
    %c0_0 = arith.constant 0 : index
    %0 = vector.load %arg2[%c0, %c0_0] : memref<4x64xf32, #tpu.memory_space<vmem>>, vector<4x64xf32>
    %c0_1 = arith.constant 0 : index
    %c0_2 = arith.constant 0 : index
    %1 = vector.load %arg3[%c0_1, %c0_2] : memref<4x1xf32, #tpu.memory_space<vmem>>, vector<4x1xf32>
    %c0_3 = arith.constant 0 : index
    %c0_4 = arith.constant 0 : index
    %2 = vector.load %arg4[%c0_3, %c0_4] : memref<64x4xf32, #tpu.memory_space<vmem>>, vector<64x4xf32>
    %c0_5 = arith.constant 0 : index
    %c0_6 = arith.constant 0 : index
    %3 = vector.load %arg5[%c0_5, %c0_6] : memref<64x1xf32, #tpu.memory_space<vmem>>, vector<64x1xf32>
    %c0_7 = arith.constant 0 : index
    %c0_8 = arith.constant 0 : index
    %4 = vector.load %arg6[%c0_7, %c0_8] : memref<256x1xf32, #tpu.memory_space<vmem>>, vector<256x1xf32>
    %c0_i32 = arith.constant 0 : i32
    %5 = arith.index_cast %c0_i32 : i32 to index
    %c0_9 = arith.constant 0 : index
    %c0_10 = arith.constant 0 : index
    %6 = vector.load %arg1[%5, %c0_9, %c0_10] : memref<1x64x256xf32, #tpu.memory_space<vmem>>, vector<1x64x256xf32>
    %7 = vector.shape_cast %6 : vector<1x64x256xf32> to vector<64x256xf32>
    %cst = arith.constant dense<0.000000e+00> : vector<64x1xf32>
    %8 = tpu.matmul %7, %4, %cst {dimension_numbers = #tpu.dot_dimension_numbers<[1], [0], [0], [1], [0, 0, 1, 1], [], []>} : vector<64x256xf32>, vector<256x1xf32>, vector<64x1xf32> -> vector<64x1xf32>
    %cst_11 = arith.constant dense<0.000000e+00> : vector<4x1xf32>
    %9 = tpu.matmul %0, %8, %cst_11 {dimension_numbers = #tpu.dot_dimension_numbers<[1], [0], [0], [1], [0, 0, 1, 1], [], []>} : vector<4x64xf32>, vector<64x1xf32>, vector<4x1xf32> -> vector<4x1xf32>
    %10 = arith.addf %9, %1 : vector<4x1xf32>
    %cst_12 = arith.constant 0.000000e+00 : f32
    %11 = vector.broadcast %cst_12 : f32 to vector<4x1xf32>
    %12 = arith.maximumf %10, %11 : vector<4x1xf32>
    %cst_13 = arith.constant dense<0.000000e+00> : vector<64x1xf32>
    %13 = tpu.matmul %2, %12, %cst_13 {dimension_numbers = #tpu.dot_dimension_numbers<[1], [0], [0], [1], [0, 0, 1, 1], [], []>} : vector<64x4xf32>, vector<4x1xf32>, vector<64x1xf32> -> vector<64x1xf32>
    %14 = arith.addf %13, %3 : vector<64x1xf32>
    %15 = arith.negf %14 : vector<64x1xf32>
    %16 = math.exp %15 : vector<64x1xf32>
    %cst_14 = arith.constant 1.000000e+00 : f32
    %17 = vector.broadcast %cst_14 : f32 to vector<64x1xf32>
    %18 = arith.addf %17, %16 : vector<64x1xf32>
    %19 = arith.divf %17, %18 : vector<64x1xf32>
    %20 = arith.index_cast %c0_i32 : i32 to index
    %c0_15 = arith.constant 0 : index
    %c0_16 = arith.constant 0 : index
    %21 = vector.load %arg1[%20, %c0_15, %c0_16] : memref<1x64x256xf32, #tpu.memory_space<vmem>>, vector<1x64x256xf32>
    %22 = vector.shape_cast %21 : vector<1x64x256xf32> to vector<64x256xf32>
    %23 = vector.broadcast %19 : vector<64x1xf32> to vector<64x256xf32>
    %24 = arith.mulf %22, %23 : vector<64x256xf32>
    %25 = arith.index_cast %c0_i32 : i32 to index
    %c0_17 = arith.constant 0 : index
    %c0_18 = arith.constant 0 : index
    %26 = vector.load %arg7[%25, %c0_17, %c0_18] : memref<1x64x256xf32, #tpu.memory_space<vmem>>, vector<1x64x256xf32>
    %27 = vector.shape_cast %26 : vector<1x64x256xf32> to vector<64x256xf32>
    %28 = vector.shape_cast %24 : vector<64x256xf32> to vector<1x64x256xf32>
    tpu.vector_store %arg7[%25, %c0_17, %c0_18], %28 {strides = array<i32>} : memref<1x64x256xf32, #tpu.memory_space<vmem>>, vector<1x64x256xf32>,
    %c1_i32 = arith.constant 1 : i32
    return
  }
  func.func @transform_0(%arg0: i32) -> (i32, i32, i32) {
    %c0_i32 = arith.constant 0 : i32
    %c0_i32_0 = arith.constant 0 : i32
    %c0_i32_1 = arith.constant 0 : i32
    return %arg0, %c0_i32, %c0_i32_0 : i32, i32, i32
  }
  func.func @transform_1(%arg0: i32) -> (i32, i32) {
    %c0_i32 = arith.constant 0 : i32
    %c0_i32_0 = arith.constant 0 : i32
    %c0_i32_1 = arith.constant 0 : i32
    return %c0_i32, %c0_i32_0 : i32, i32
  }
  func.func @transform_2(%arg0: i32) -> (i32, i32) {
    %c0_i32 = arith.constant 0 : i32
    %c0_i32_0 = arith.constant 0 : i32
    %c0_i32_1 = arith.constant 0 : i32
    return %c0_i32, %c0_i32_0 : i32, i32
  }
  func.func @transform_3(%arg0: i32) -> (i32, i32) {
    %c0_i32 = arith.constant 0 : i32
    %c0_i32_0 = arith.constant 0 : i32
    %c0_i32_1 = arith.constant 0 : i32
    return %c0_i32, %c0_i32_0 : i32, i32
  }
  func.func @transform_4(%arg0: i32) -> (i32, i32) {
    %c0_i32 = arith.constant 0 : i32
    %c0_i32_0 = arith.constant 0 : i32
    %c0_i32_1 = arith.constant 0 : i32
    return %c0_i32, %c0_i32_0 : i32, i32
  }
  func.func @transform_5(%arg0: i32) -> (i32, i32) {
    %c0_i32 = arith.constant 0 : i32
    %c0_i32_0 = arith.constant 0 : i32
    %c0_i32_1 = arith.constant 0 : i32
    return %c0_i32, %c0_i32_0 : i32, i32
  }
  func.func @transform_6(%arg0: i32) -> (i32, i32, i32) {
    %c0_i32 = arith.constant 0 : i32
    %c0_i32_0 = arith.constant 0 : i32
    %c0_i32_1 = arith.constant 0 : i32
    return %arg0, %c0_i32, %c0_i32_0 : i32, i32, i32
  }
}

</mosaic_0001>

<bundles_post_ra>
// kernel: tpu_custom_call.1
= control target key start
LH: loop header
LB: loop body
LE: loop exit
PB: predicated region body
PF: predicated region fallthrough
CT: control target
= control target key end

     0   :  { %11 = vsyncpa [#allocation3], 0  ;;  %s1422_s0 = inlined_call_operand.vmem [shape: f32[2,64,256], index: 0, kind: input, shape index: {}]   ;;  %s1423_s1 = inlined_call_operand.vmem [shape: f32[4,64], index: 1, kind: input, shape index: {}]   ;;  %s1424_s2 = inlined_call_operand.vmem [shape: f32[4,1], index: 2, kind: input, shape index: {}]   ;;  %s1425_s3 = inlined_call_operand.vmem [shape: f32[64,4], index: 3, kind: input, shape index: {}]   ;;  %s1426_s4 = inlined_call_operand.vmem [shape: f32[64,1], index: 4, kind: input, shape index: {}]   ;;  %s1427_s5 = inlined_call_operand.vmem [shape: f32[256,1], index: 5, kind: input, shape index: {}]   ;;  %s1428_s6 = inlined_call_operand.hbm [shape: f32[2,64,256], index: 6, kind: output, shape index: {}]  }
   0x1   :  { %13 = vsyncpa [#allocation3 + $0x1], 0  ;;  %s1038_s21 = smov 0   ;;  %s1040_s22 = smov 0  }
   0x2   :  { %s1042_s23 = smov 0   ;;  %s1044_s24 = smov 0  }
   0x3 LB: > { %s1059_s25 = sadd.s32 4294967295, %s998_s24   ;;  %s795_s26 = sadd.s32 4294967294, %s998_s24   ;;  %s998_s24 = sphi %s1044_s24, %s1434_s24   ;;  %s994_s23 = sphi %s1042_s23, %s1433_s23   ;;  %s990_s22 = sphi %s1040_s22, %s1432_s22   ;;  %s986_s21 = sphi %s1038_s21, %s1431_s21  }
   0x4   : > { %s1063_s27 = sadd.s32 1, %s998_s24   ;;  %s157_s28 = sadd.s32 1, %s994_s23 }
   0x5   : > { %s154_s29 = ssub.s32 %s998_s24, %s1063_s27  ;;  %p167_p0 = scmp.ne.s32.totalorder %s994_s23, %s990_s22 }
   0x6   : > { %p155_p1 = scmp.eq.s32.totalorder %s154_s29, 0  ;;  %p168_p2 = scmp.eq.s32.totalorder %s1059_s25, 1 }
   0x7   : > { %p173_p3 = scmp.ne.s32.totalorder %s990_s22, %s986_s21  ;;  %p174_p4 = scmp.eq.s32.totalorder %s795_s26, 1 }
   0x8   : > { %s1074_s30 = scalar_select %p155_p1, %s994_s23, %s157_s28  }
   0x9   : > { %p1076_p5 = por %p168_p2, %p167_p0  ;;  %p1080_p6 = por %p174_p4, %p173_p3 }
   0xa   : > { %p798_p7 = scmp.ge.s32.totalorder %s998_s24, 1  ;;  %p215_p8 = scmp.lt.s32.totalorder %s998_s24, 3 }
   0xc   : > { %p216_p9 = pnand %p798_p7, %p215_p8 }
   0xd   : > { %p245_p10 = scmp.lt.s32.totalorder (!%p216_p9), %s1059_s25, 1  ;;  %s242_s9 = sand.u32 (!%p216_p9), 1, %s990_s22  }
   0xe   : > { %219 = sbr.rel (%p216_p9) target bundleno = 717 (0x2cd), region = 44  ;;  %s799_s11 = sshll.u32 (!%p216_p9), %s242_s9, 7 }
   0xf   : > { %s1356_s12 = scalar_lea.vmem (!%p216_p9), [#allocation2], %s799_s11  ;;  %s826_s13 = sshll.u32 (!%p216_p9), %s1059_s25, 7 }
  0x10   : > { %s729_s15 = scalar_lea.hbm (!%p216_p9), %s1428_s6, %s826_s13  ;;  %s730_s16 = sshll.u32 (!%p216_p9), %s1356_s12, 4  ;;  %s731_s16 = int_to_ptr.vmem [resolvable:$true] %s730_s16 }
  0x11   : > { %s732_s17 = sshll.u32 (!%p216_p9), %s729_s15, 4  ;;  %s956_s28 = scalar_lea.hbm (!%p216_p9), %s1428_s6, 256  ;;  %s733_s17 = int_to_ptr.hbm [resolvable:$true] %s732_s17 }
  0x12   : > { %s950_s18 = sshra.s32 (!%p216_p9), %s733_s17, 4  ;;  %s951_s18 = int_to_ptr.hbm [resolvable:$true] %s950_s18 }
  0x13   : > { %v283_v0 = vld [vmem:[%s1427_s5 + $0x78] sm:$0xff]  ;;  %v282_v1 = vld [vmem:[%s1427_s5 + $0x70] sm:$0xff]  ;;  %v281_v3 = vld [vmem:[%s1427_s5 + $0x68] sm:$0xff]  ;;  %s246_s10 = scalar_select %p245_p10, %s1059_s25, 1  ;;  %vm398_vm0 = vcmask 523264   ;;  %vm448_vm1 = vcmask 1043456  }
  0x14   : > { %827 = vmatpush.msra.mxu2 %v283_v0  ;;  %316 = vmatpush.msra.mxu0 %v283_v0  ;;  %v1095_v2 = vld [vmem:[%s1427_s5 + $0xf8] sm:$0xff]  ;;  %v1104_v4 = vld [vmem:[%s1427_s5 + $0xf0] sm:$0xff]  ;;  %v1109_v5 = vld [vmem:[%s1427_s5 + $0xe8] sm:$0xff]  ;;  %vm423_vm2 = vcmask 31744   ;;  %s718_s25 = scalar_lea.sflag [#allocation3], %s242_s9  ;;  %p957_p0 = scmp.lt.s32.totalorder %s951_s18, %s1428_s6 }
  0x15   : > { %357 = vmatpush.msra.mxu1 %v1095_v2  ;;  %v280_v6 = vld [vmem:[%s1427_s5 + $0x60] sm:$0xff]  ;;  %v279_v8 = vld [vmem:[%s1427_s5 + $0x58] sm:$0xff]  ;;  %v278_v10 = vld [vmem:[%s1427_s5 + $0x50] sm:$0xff]  ;;  %s825_s19 = sshll.u32 %s246_s10, 7 }
  0x16   : > { %828 = vmatpush.msra.mxu2 %v282_v1  ;;  %317 = vmatpush.msra.mxu0 %v282_v1  ;;  %v1118_v7 = vld [vmem:[%s1427_s5 + $0xe0] sm:$0xff]  ;;  %v1127_v9 = vld [vmem:[%s1427_s5 + $0xd8] sm:$0xff]  ;;  %v1136_v11 = vld [vmem:[%s1427_s5 + $0xd0] sm:$0xff]  ;;  %s1208_s10 = scalar_lea.vmem %s1422_s0, %s825_s19  ;;  %s952_s19 = scalar_lea.hbm %s951_s18, 128 }
  0x17   : > { %358 = vmatpush.msra.mxu1 %v1104_v4  ;;  %v277_v12 = vld [vmem:[%s1427_s5 + $0x48] sm:$0xff]  ;;  %v276_v14 = vld [vmem:[%s1427_s5 + $0x40] sm:$0xff]  ;;  %v275_v16 = vld [vmem:[%s1427_s5 + $0x38] sm:$0xff]  ;;  %p953_p11 = scmp.ne.s32.totalorder %s951_s18, %s952_s19  ;;  %p958_p1 = scmp.lt.s32.totalorder %s956_s28, %s952_s19 }
  0x18   : > { %829 = vmatpush.msra.mxu2 %v281_v3  ;;  %318 = vmatpush.msra.mxu0 %v281_v3  ;;  %v1145_v13 = vld [vmem:[%s1427_s5 + $0xc8] sm:$0xff]  ;;  %v1154_v15 = vld [vmem:[%s1427_s5 + $0xc0] sm:$0xff]  ;;  %v1163_v17 = vld [vmem:[%s1427_s5 + $0xb8] sm:$0xff] }
  0x19   : > { %359 = vmatpush.msra.mxu1 %v1109_v5  ;;  %v274_v18 = vld [vmem:[%s1427_s5 + $0x30] sm:$0xff]  ;;  %v273_v20 = vld [vmem:[%s1427_s5 + $0x28] sm:$0xff]  ;;  %v272_v22 = vld [vmem:[%s1427_s5 + $0x20] sm:$0xff]  ;;  %p954_p12 = pnand %p953_p11, %p1076_p5  ;;  %p959_p2 = por %p958_p1, %p957_p0 }
  0x1a   : > { %830 = vmatpush.msra.mxu2 %v280_v6  ;;  %319 = vmatpush.msra.mxu0 %v280_v6  ;;  %v290_v19 = vld [vmem:[%s1427_s5 + $0xb0] sm:$0xff]  ;;  %v289_v21 = vld [vmem:[%s1427_s5 + $0xa8] sm:$0xff]  ;;  %v288_v23 = vld [vmem:[%s1427_s5 + $0xa0] sm:$0xff] }
  0x1b   : > { %360 = vmatpush.msra.mxu1 %v1118_v7  ;;  %v271_v24 = vld [vmem:[%s1427_s5 + $0x18] sm:$0xff]  ;;  %v270_v26 = vld [vmem:[%s1427_s5 + $0x10] sm:$0xff]  ;;  %v269_v28 = vld [vmem:[%s1427_s5 + $0x8] sm:$0xff]  ;;  %p955_p13 = pneg %p954_p12 }
  0x1c   : > { %831 = vmatpush.msra.mxu2 %v279_v8  ;;  %320 = vmatpush.msra.mxu0 %v279_v8  ;;  %v287_v25 = vld [vmem:[%s1427_s5 + $0x98] sm:$0xff]  ;;  %v286_v27 = vld [vmem:[%s1427_s5 + $0x90] sm:$0xff]  ;;  %v285_v29 = vld [vmem:[%s1427_s5 + $0x88] sm:$0xff] }
  0x1d   : > { %361 = vmatpush.msra.mxu1 %v1127_v9  ;;  %v268_v30 = vld [vmem:[%s1427_s5] sm:$0xff]  ;;  %v1220_v33 = vld [vmem:[%s1208_s10 + $0x8] sm:$0xff]  ;;  %v1233_v35 = vld [vmem:[%s1208_s10 + $0x10] sm:$0xff]  ;;  %p960_p3 = pnand %p959_p2, %p955_p13 }
  0x1e   : > { %832 = vmatpush.msra.mxu2 %v278_v10  ;;  %321 = vmatpush.msra.mxu0 %v278_v10  ;;  %v284_v31 = vld [vmem:[%s1427_s5 + $0x80] sm:$0xff]  ;;  %v1236_v36 = vld [vmem:[%s1208_s10 + $0x18] sm:$0xff]  ;;  %v1240_v37 = vld [vmem:[%s1208_s10 + $0x70] sm:$0xff] }
  0x1f   : > { %362 = vmatpush.msra.mxu1 %v1136_v11  ;;  %v1217_v32 = vld [vmem:[%s1208_s10] sm:$0xff]  ;;  %v1252_v39 = vld [vmem:[%s1208_s10 + $0x28] sm:$0xff]  ;;  %v1258_v40 = vld [vmem:[%s1208_s10 + $0x30] sm:$0xff] }
  0x20   : > { %833 = vmatpush.msra.mxu2 %v277_v12  ;;  %322 = vmatpush.msra.mxu0 %v277_v12  ;;  %v1224_v34 = vld [vmem:[%s1208_s10 + $0x60] sm:$0xff]  ;;  %v1261_v41 = vld [vmem:[%s1208_s10 + $0x38] sm:$0xff]  ;;  %v1266_v42 = vld [vmem:[%s1208_s10 + $0x68] sm:$0xff] }
  0x21   : > { %363 = vmatpush.msra.mxu1 %v1145_v13  ;;  %v1249_v38 = vld [vmem:[%s1208_s10 + $0x20] sm:$0xff]  ;;  %v1272_v44 = vld [vmem:[%s1208_s10 + $0x48] sm:$0xff]  ;;  %v1278_v45 = vld [vmem:[%s1208_s10 + $0x78] sm:$0xff] }
  0x22   : > { %834 = vmatpush.msra.mxu2 %v276_v14  ;;  %323 = vmatpush.msra.mxu0 %v276_v14  ;;  %v1269_v43 = vld [vmem:[%s1208_s10 + $0x40] sm:$0xff]  ;;  %v1281_v46 = vld [vmem:[%s1208_s10 + $0x50] sm:$0xff]  ;;  %v1284_v47 = vld [vmem:[%s1208_s10 + $0x58] sm:$0xff] }
  0x23   : > { %364 = vmatpush.msra.mxu1 %v1154_v15  ;;  %v250_v8 = vld [vmem:[%s1423_s1] sm:$0xf]  ;;  %v253_v14 = vld [vmem:[%s1425_s3 + $0x8] sm:$0xff] }
  0x24   : > { %835 = vmatpush.msra.mxu2 %v275_v16  ;;  %324 = vmatpush.msra.mxu0 %v275_v16  ;;  %v255_v16 = vld [vmem:[%s1425_s3 + $0x18] sm:$0xff] }
  0x25   : > { %365 = vmatpush.msra.mxu1 %v1163_v17 }
  0x26   : > { %836 = vmatpush.msra.mxu2 %v274_v18  ;;  %325 = vmatpush.msra.mxu0 %v274_v18  ;;  %v257_v18 = vld [vmem:[%s1425_s3 + $0x28] sm:$0xff] }
  0x27   : > { %366 = vmatpush.msra.mxu1 %v290_v19 }
  0x28   : > { %837 = vmatpush.msra.mxu2 %v273_v20  ;;  %326 = vmatpush.msra.mxu0 %v273_v20  ;;  %v259_v20 = vld [vmem:[%s1425_s3 + $0x38] sm:$0xff] }
  0x29   : > { %367 = vmatpush.msra.mxu1 %v289_v21 }
  0x2a   : > { %838 = vmatpush.msra.mxu2 %v272_v22  ;;  %327 = vmatpush.msra.mxu0 %v272_v22  ;;  %v1000_v22 = vmov 0  }
  0x2b   : > { %368 = vmatpush.msra.mxu1 %v288_v23  ;;  %901 = vset.pattern.permute.xlu0 %v1000_v22 }
  0x2c   : > { %839 = vmatpush.msra.mxu2 %v271_v24  ;;  %328 = vmatpush.msra.mxu0 %v271_v24 }
  0x2d   : > { %369 = vmatpush.msra.mxu1 %v287_v25  ;;  %902 = vset.pattern.permute.xlu1 %v1000_v22 }
  0x2e   : > { %840 = vmatpush.msra.mxu2 %v270_v26  ;;  %329 = vmatpush.msra.mxu0 %v270_v26  ;;  %v261_v26 = vld [vmem:[%s1426_s4 + $0x8] sm:$0xff] }
  0x2f   : > { %370 = vmatpush.msra.mxu1 %v286_v27  ;;  %903 = vset.pattern.permute.xlu2 %v1000_v22 }
  0x30   : > { %841 = vmatpush.msra.mxu2 %v269_v28  ;;  %330 = vmatpush.msra.mxu0 %v269_v28 }
  0x31   : > { %371 = vmatpush.msra.mxu1 %v285_v29 }
  0x32   : > { %842 = vmatpush.msra.mxu2 %v268_v30  ;;  %331 = vmatpush.msra.mxu0 %v268_v30 }
  0x33   : > { %372 = vmatpush.msra.mxu1 %v284_v31  ;;  %332 = vmatmul.f32.vlgmr.msra.gmra.mxu0 %v1217_v32 }
  0x34   : > { %843 = vmatpush.msrb.mxu2 %v1095_v2  ;;  %373 = vmatmul.f32.vlgmr.msra.gmra.mxu1 %v1220_v33 }
  0x35   : > { %350 = vmatmul.f32.vlgmr.msra.gmra.mxu2 %v1224_v34 }
  0x36   : > { %844 = vmatpush.msrb.mxu2 %v1104_v4 }
  0x38   : > { %845 = vmatpush.msrb.mxu2 %v1109_v5 }
  0x3a   : > { %846 = vmatpush.msrb.mxu2 %v1118_v7 }
  0x3b   : > { %335 = vmatmul.f32.gmra.mxu0 %v1233_v35 }
  0x3c   : > { %847 = vmatpush.msrb.mxu2 %v1127_v9  ;;  %376 = vmatmul.f32.gmra.mxu1 %v1236_v36  ;;  %v251_v9 = vld [vmem:[%s1424_s2] sm:$0xf] }
  0x3d   : > { %353 = vmatmul.f32.gmra.mxu2 %v1240_v37 }
  0x3e   : > { %848 = vmatpush.msrb.mxu2 %v1136_v11 }
  0x40   : > { %849 = vmatpush.msrb.mxu2 %v1145_v13  ;;  %v252_v13 = vld [vmem:[%s1425_s3] sm:$0xff] }
  0x42   : > { %850 = vmatpush.msrb.mxu2 %v1154_v15  ;;  %v254_v15 = vld [vmem:[%s1425_s3 + $0x10] sm:$0xff] }
  0x43   : > { %338 = vmatmul.f32.gmra.mxu0 %v1249_v38 }
  0x44   : > { %851 = vmatpush.msrb.mxu2 %v1163_v17  ;;  %379 = vmatmul.f32.gmra.mxu1 %v1252_v39  ;;  %v256_v17 = vld [vmem:[%s1425_s3 + $0x20] sm:$0xff] }
  0x46   : > { %852 = vmatpush.msrb.mxu2 %v290_v19  ;;  %v258_v19 = vld [vmem:[%s1425_s3 + $0x30] sm:$0xff] }
  0x48   : > { %853 = vmatpush.msrb.mxu2 %v289_v21  ;;  %v260_v21 = vld [vmem:[%s1426_s4] sm:$0xff] }
  0x4a   : > { %854 = vmatpush.msrb.mxu2 %v288_v23 }
  0x4b   : > { %341 = vmatmul.f32.gmra.mxu0 %v1258_v40 }
  0x4c   : > { %855 = vmatpush.msrb.mxu2 %v287_v25  ;;  %382 = vmatmul.f32.gmra.mxu1 %v1261_v41 }
  0x4e   : > { %856 = vmatpush.msrb.mxu2 %v286_v27 }
  0x50   : > { %857 = vmatpush.msrb.mxu2 %v285_v29 }
  0x52   : > { %858 = vmatpush.msrb.mxu2 %v284_v31 }
  0x53   : > { %391 = vmatmul.f32.vlgmr.msrb.gmra.mxu2 %v1266_v42  ;;  %344 = vmatmul.f32.gmra.mxu0 %v1269_v43 }
  0x54   : > { %385 = vmatmul.f32.gmra.mxu1 %v1272_v44 }
  0x5b   : > { %394 = vmatmul.f32.gmra.mxu2 %v1278_v45  ;;  %347 = vmatmul.f32.gmra.mxu0 %v1281_v46 }
  0x5c   : > { %388 = vmatmul.f32.gmra.mxu1 %v1284_v47 }
  0xb0   : > { %v333_v48 = vpop.f32.mrf.mxu0 }
  0xb1   : > { %v374_v49 = vpop.f32.mrf.mxu1 }
  0xb2   : > { %v375_v7 = vadd.f32 %v374_v49, %v333_v48  ;;  %v262_v48 = vld [vmem:[%s1426_s4 + $0x10] sm:$0xff] }
  0xb8   : > { %v336_v50 = vpop.f32.mrf.mxu0  ;;  %v351_v52 = vpop.f32.mrf.mxu2 }
  0xb9   : > { %v377_v51 = vpop.f32.mrf.mxu1 }
  0xba   : > { %v378_v6 = vadd.f32 %v377_v51, %v336_v50 }
  0xc0   : > { %v339_v53 = vpop.f32.mrf.mxu0  ;;  %v354_v57 = vpop.f32.mrf.mxu2 }
  0xc1   : > { %v380_v54 = vpop.f32.mrf.mxu1 }
  0xc2   : > { %v381_v5 = vadd.f32 %v380_v54, %v339_v53 }
  0xc8   : > { %v342_v55 = vpop.f32.mrf.mxu0 }
  0xc9   : > { %v383_v56 = vpop.f32.mrf.mxu1 }
  0xca   : > { %v384_v4 = vadd.f32 %v383_v56, %v342_v55  ;;  %v263_v56 = vld [vmem:[%s1426_s4 + $0x18] sm:$0xff] }
  0xd0   : > { %v345_v58 = vpop.f32.mrf.mxu0 }
  0xd1   : > { %v386_v59 = vpop.f32.mrf.mxu1 }
  0xd2   : > { %v387_v3 = vadd.f32 %v386_v59, %v345_v58 }
  0xd6   : > { %v392_v60 = vpop.f32.mrf.mxu2 }
  0xd7   : > { %v393_v1 = vadd.f32 %v392_v60, %v351_v52 }
  0xd8   : > { %v348_v61 = vpop.f32.mrf.mxu0 }
  0xd9   : > { %v389_v63 = vpop.f32.mrf.mxu1 }
  0xda   : > { %v390_v2 = vadd.f32 %v389_v63, %v348_v61 }
  0xde   : > { %v395_v62 = vpop.f32.mrf.mxu2 }
  0xdf   : > { %v396_v0 = vadd.f32 %v395_v62, %v354_v57 }
  0xe1   : > { %410 = vmatpush.msra.mxu2 %v396_v0 }
  0xe3   : > { %411 = vmatpush.msra.mxu2 %v393_v1 }
  0xe5   : > { %412 = vmatpush.msra.mxu2 %v390_v2 }
  0xe7   : > { %413 = vmatpush.msra.mxu2 %v387_v3 }
  0xe9   : > { %414 = vmatpush.msra.mxu2 %v384_v4 }
  0xeb   : > { %415 = vmatpush.msra.mxu2 %v381_v5 }
  0xed   : > { %416 = vmatpush.msra.mxu2 %v378_v6 }
  0xef   : > { %417 = vmatpush.msra.mxu2 %v375_v7 }
  0xf0   : > { %802 = vmatmul.msk.f32.vlgmr.msra.gmra.mxu2 %vm398_vm0, %v250_v8  ;;  %v264_v8 = vld [vmem:[%s1426_s4 + $0x20] sm:$0xff] }
 0x173   : > { %v419_v10 = vpop.f32.mrf.mxu2 }
 0x174   : > { %v420_v11 = vadd.f32 %v419_v10, %v251_v9 }
 0x176   : > { %v422_v12 = vmax.f32 %v420_v11, 0.0 }
 0x178   : > { %803 = vmatpush.msk.msra.mxu3 %vm448_vm1, %v422_v12 }
 0x179   : > { %804 = vmatmul.msk.f32.vlgmr.msra.gmra.mxu3 %vm423_vm2, %v252_v13 }
 0x181   : > { %805 = vmatmul.msk.f32.gmra.mxu3 %vm423_vm2, %v253_v14 }
 0x189   : > { %806 = vmatmul.msk.f32.gmra.mxu3 %vm423_vm2, %v254_v15 }
 0x191   : > { %807 = vmatmul.msk.f32.gmra.mxu3 %vm423_vm2, %v255_v16 }
 0x199   : > { %808 = vmatmul.msk.f32.gmra.mxu3 %vm423_vm2, %v256_v17 }
 0x1a1   : > { %809 = vmatmul.msk.f32.gmra.mxu3 %vm423_vm2, %v257_v18 }
 0x1a9   : > { %810 = vmatmul.msk.f32.gmra.mxu3 %vm423_vm2, %v258_v19 }
 0x1b1   : > { %811 = vmatmul.msk.f32.gmra.mxu3 %vm423_vm2, %v259_v20 }
 0x1fc   : > { %v469_v23 = vpop.f32.mrf.mxu3 }
 0x1fd   : > { %v470_v24 = vadd.f32 %v469_v23, %v260_v21 }
 0x1ff   : > { %v812_v25 = vmul.f32 -1.442695, %v470_v24  ;;  %v265_v24 = vld [vmem:[%s1426_s4 + $0x28] sm:$0xff] }
 0x201   : > { %904 = vpow2.f32 %v812_v25 }
 0x204   : > { %v472_v27 = vpop.f32.mrf.mxu3 }
 0x205   : > { %v473_v28 = vadd.f32 %v472_v27, %v261_v26 }
 0x207   : > { %v905_v29 = vpop.eup %904  ;;  %v813_v30 = vmul.f32 -1.442695, %v473_v28 }
 0x208   : > { %v517_v31 = vadd.f32 1.0, %v905_v29 }
 0x209   : > { %906 = vpow2.f32 %v813_v30 }
 0x20a   : > { %908 = vrcp.f32 %v517_v31  ;;  %v536_v59 = vand.u32 2147483648, %v517_v31  ;;  %v534_v62 = vand.u32 2147483647, %v517_v31  ;;  %vm530_vm4 = vweird.f32 %v517_v31 }
 0x20c   : > { %v475_v49 = vpop.f32.mrf.mxu3  ;;  %v537_v4 = vor.u32 1.1754944e-38, %v536_v59  ;;  %vm535_vm6 = vcmp.eq.f32.partialorder %v534_v62, 8.507059e+37 }
 0x20d   : > { %v476_v50 = vadd.f32 %v475_v49, %v262_v48 }
 0x20f   : > { %v907_v51 = vpop.eup %906  ;;  %v814_v52 = vmul.f32 -1.442695, %v476_v50 }
 0x210   : > { %v909_v53 = vpop.eup %908  ;;  %v518_v54 = vadd.f32 1.0, %v907_v51 }
 0x211   : > { %910 = vpow2.f32 %v814_v52  ;;  %v526_v55 = vmul.f32 %v909_v53, %v517_v31  ;;  %vm531_vm3 = vweird.f32 %v909_v53 }
 0x212   : > { %912 = vrcp.f32 %v518_v54  ;;  %vm532_vm5 = vmor %vm530_vm4, %vm531_vm3  ;;  %v551_v11 = vand.u32 2147483648, %v518_v54  ;;  %v549_v14 = vand.u32 2147483647, %v518_v54  ;;  %vm545_vm8 = vweird.f32 %v518_v54 }
 0x213   : > { %v527_v57 = vsub.f32 1.0, %v526_v55 }
 0x214   : > { %v478_v58 = vpop.f32.mrf.mxu3  ;;  %v552_v20 = vor.u32 1.1754944e-38, %v551_v11  ;;  %vm550_vm10 = vcmp.eq.f32.partialorder %v549_v14, 8.507059e+37 }
 0x215   : > { %v479_v60 = vadd.f32 %v478_v58, %v263_v56  ;;  %v528_v61 = vmul.f32 %v909_v53, %v527_v57  ;;  %v266_v56 = vld [vmem:[%s1426_s4 + $0x30] sm:$0xff] }
 0x217   : > { %v911_v63 = vpop.eup %910  ;;  %v815_v0 = vmul.f32 -1.442695, %v479_v60  ;;  %v529_v1 = vadd.f32 %v909_v53, %v528_v61 }
 0x218   : > { %v913_v2 = vpop.eup %912  ;;  %v519_v3 = vadd.f32 1.0, %v911_v63 }
 0x219   : > { %914 = vpow2.f32 %v815_v0  ;;  %v533_v5 = vsel %vm532_vm5, %v909_v53, %v529_v1  ;;  %v541_v6 = vmul.f32 %v913_v2, %v518_v54  ;;  %vm546_vm7 = vweird.f32 %v913_v2 }
 0x21a   : > { %916 = vrcp.f32 %v519_v3  ;;  %v538_v7 = vsel %vm535_vm6, %v537_v4, %v533_v5  ;;  %vm547_vm9 = vmor %vm545_vm8, %vm546_vm7  ;;  %v566_v27 = vand.u32 2147483648, %v519_v3  ;;  %v564_v30 = vand.u32 2147483647, %v519_v3 }
 0x21b   : > { %647 = vperm.xlu0 %901, %v538_v7   ;;  %v542_v9 = vsub.f32 1.0, %v541_v6  ;;  %vm560_vm12 = vweird.f32 %v519_v3 }
 0x21c   : > { %v481_v10 = vpop.f32.mrf.mxu3  ;;  %v567_v52 = vor.u32 1.1754944e-38, %v566_v27  ;;  %vm565_vm14 = vcmp.eq.f32.partialorder %v564_v30, 8.507059e+37 }
 0x21d   : > { %v482_v12 = vadd.f32 %v481_v10, %v264_v8  ;;  %v543_v13 = vmul.f32 %v913_v2, %v542_v9  ;;  %v267_v8 = vld [vmem:[%s1426_s4 + $0x38] sm:$0xff] }
 0x21f   : > { %v915_v15 = vpop.eup %914  ;;  %v816_v16 = vmul.f32 -1.442695, %v482_v12  ;;  %v544_v17 = vadd.f32 %v913_v2, %v543_v13 }
 0x220   : > { %v917_v18 = vpop.eup %916  ;;  %v520_v19 = vadd.f32 1.0, %v915_v15 }
 0x221   : > { %918 = vpow2.f32 %v816_v16  ;;  %v548_v21 = vsel %vm547_vm9, %v913_v2, %v544_v17  ;;  %v556_v22 = vmul.f32 %v917_v18, %v519_v3  ;;  %vm561_vm11 = vweird.f32 %v917_v18 }
 0x222   : > { %920 = vrcp.f32 %v520_v19  ;;  %v553_v23 = vsel %vm550_vm10, %v552_v20, %v548_v21  ;;  %vm562_vm13 = vmor %vm560_vm12, %vm561_vm11  ;;  %v581_v59 = vand.u32 2147483648, %v520_v19  ;;  %v579_v62 = vand.u32 2147483647, %v520_v19 }
 0x223   : > { %652 = vperm.xlu0 %901, %v553_v23   ;;  %v557_v25 = vsub.f32 1.0, %v556_v22  ;;  %vm575_vm0 = vweird.f32 %v520_v19 }
 0x224   : > { %v484_v26 = vpop.f32.mrf.mxu3  ;;  %v582_v4 = vor.u32 1.1754944e-38, %v581_v59  ;;  %vm580_vm2 = vcmp.eq.f32.partialorder %v579_v62, 8.507059e+37 }
 0x225   : > { %v485_v28 = vadd.f32 %v484_v26, %v265_v24  ;;  %v558_v29 = vmul.f32 %v917_v18, %v557_v25 }
 0x227   : > { %v919_v31 = vpop.eup %918  ;;  %v817_v48 = vmul.f32 -1.442695, %v485_v28  ;;  %v559_v49 = vadd.f32 %v917_v18, %v558_v29 }
 0x228   : > { %v921_v50 = vpop.eup %920  ;;  %v521_v51 = vadd.f32 1.0, %v919_v31 }
 0x229   : > { %922 = vpow2.f32 %v817_v48  ;;  %v563_v53 = vsel %vm562_vm13, %v917_v18, %v559_v49  ;;  %v571_v54 = vmul.f32 %v921_v50, %v520_v19  ;;  %vm576_vm15 = vweird.f32 %v921_v50 }
 0x22a   : > { %924 = vrcp.f32 %v521_v51  ;;  %v568_v55 = vsel %vm565_vm14, %v567_v52, %v563_v53  ;;  %vm577_vm1 = vmor %vm575_vm0, %vm576_vm15  ;;  %v596_v11 = vand.u32 2147483648, %v521_v51  ;;  %v594_v14 = vand.u32 2147483647, %v521_v51 }
 0x22b   : > { %657 = vperm.xlu1 %902, %v568_v55   ;;  %v572_v57 = vsub.f32 1.0, %v571_v54  ;;  %vm590_vm4 = vweird.f32 %v521_v51 }
 0x22c   : > { %v487_v58 = vpop.f32.mrf.mxu3  ;;  %v597_v20 = vor.u32 1.1754944e-38, %v596_v11  ;;  %vm595_vm6 = vcmp.eq.f32.partialorder %v594_v14, 8.507059e+37 }
 0x22d   : > { %v488_v60 = vadd.f32 %v487_v58, %v266_v56  ;;  %v573_v61 = vmul.f32 %v921_v50, %v572_v57 }
 0x22f   : > { %v923_v63 = vpop.eup %922  ;;  %v818_v0 = vmul.f32 -1.442695, %v488_v60  ;;  %v574_v1 = vadd.f32 %v921_v50, %v573_v61 }
 0x230   : > { %v925_v2 = vpop.eup %924  ;;  %v522_v3 = vadd.f32 1.0, %v923_v63 }
 0x231   : > { %926 = vpow2.f32 %v818_v0  ;;  %v578_v5 = vsel %vm577_vm1, %v921_v50, %v574_v1  ;;  %v586_v6 = vmul.f32 %v925_v2, %v521_v51  ;;  %vm591_vm3 = vweird.f32 %v925_v2 }
 0x232   : > { %928 = vrcp.f32 %v522_v3  ;;  %v583_v7 = vsel %vm580_vm2, %v582_v4, %v578_v5  ;;  %vm592_vm5 = vmor %vm590_vm4, %vm591_vm3  ;;  %v611_v25 = vand.u32 2147483648, %v522_v3  ;;  %v609_v27 = vand.u32 2147483647, %v522_v3 }
 0x233   : > { %662 = vperm.xlu1 %902, %v583_v7   ;;  %v587_v9 = vsub.f32 1.0, %v586_v6  ;;  %vm605_vm8 = vweird.f32 %v522_v3 }
 0x234   : > { %v490_v10 = vpop.f32.mrf.mxu3  ;;  %v612_v48 = vor.u32 1.1754944e-38, %v611_v25  ;;  %vm610_vm10 = vcmp.eq.f32.partialorder %v609_v27, 8.507059e+37 }
 0x235   : > { %v491_v12 = vadd.f32 %v490_v10, %v267_v8  ;;  %v588_v13 = vmul.f32 %v925_v2, %v587_v9 }
 0x237   : > { %v927_v15 = vpop.eup %926  ;;  %v819_v16 = vmul.f32 -1.442695, %v491_v12  ;;  %v589_v17 = vadd.f32 %v925_v2, %v588_v13 }
 0x238   : > { %v929_v18 = vpop.eup %928  ;;  %v523_v19 = vadd.f32 1.0, %v927_v15 }
 0x239   : > { %930 = vpow2.f32 %v819_v16  ;;  %v593_v21 = vsel %vm592_vm5, %v925_v2, %v589_v17  ;;  %v601_v22 = vmul.f32 %v929_v18, %v522_v3  ;;  %vm606_vm7 = vweird.f32 %v929_v18 }
 0x23a   : > { %932 = vrcp.f32 %v523_v19  ;;  %v598_v23 = vsel %vm595_vm6, %v597_v20, %v593_v21  ;;  %vm607_vm9 = vmor %vm605_vm8, %vm606_vm7  ;;  %v626_v53 = vand.u32 2147483648, %v523_v19  ;;  %v624_v55 = vand.u32 2147483647, %v523_v19 }
 0x23b   : > { %667 = vperm.xlu2 %903, %v598_v23   ;;  %v602_v24 = vsub.f32 1.0, %v601_v22  ;;  %vm620_vm12 = vweird.f32 %v523_v19 }
 0x23c   : > { %v627_v58 = vor.u32 1.1754944e-38, %v626_v53  ;;  %vm625_vm14 = vcmp.eq.f32.partialorder %v624_v55, 8.507059e+37 }
 0x23d   : > { %v603_v26 = vmul.f32 %v929_v18, %v602_v24 }
 0x23f   : > { %v931_v28 = vpop.eup %930  ;;  %v604_v29 = vadd.f32 %v929_v18, %v603_v26 }
 0x240   : > { %v933_v30 = vpop.eup %932  ;;  %v524_v31 = vadd.f32 1.0, %v931_v28 }
 0x241   : > { %v608_v49 = vsel %vm607_vm9, %v929_v18, %v604_v29  ;;  %v616_v50 = vmul.f32 %v933_v30, %v523_v19  ;;  %vm621_vm11 = vweird.f32 %v933_v30 }
 0x242   : > { %934 = vrcp.f32 %v524_v31  ;;  %v613_v51 = vsel %vm610_vm10, %v612_v48, %v608_v49  ;;  %vm622_vm13 = vmor %vm620_vm12, %vm621_vm11  ;;  %v641_v63 = vand.u32 2147483648, %v524_v31  ;;  %v639_v1 = vand.u32 2147483647, %v524_v31 }
 0x243   : > { %672 = vperm.xlu2 %903, %v613_v51   ;;  %v617_v52 = vsub.f32 1.0, %v616_v50  ;;  %vm635_vm0 = vweird.f32 %v524_v31 }
 0x244   : > { %v642_v3 = vor.u32 1.1754944e-38, %v641_v63  ;;  %vm640_vm2 = vcmp.eq.f32.partialorder %v639_v1, 8.507059e+37 }
 0x245   : > { %v618_v54 = vmul.f32 %v933_v30, %v617_v52 }
 0x247   : > { %v619_v56 = vadd.f32 %v933_v30, %v618_v54 }
 0x248   : > { %v935_v57 = vpop.eup %934 }
 0x249   : > { %v623_v59 = vsel %vm622_vm13, %v933_v30, %v619_v56  ;;  %v631_v60 = vmul.f32 %v935_v57, %v524_v31  ;;  %vm636_vm15 = vweird.f32 %v935_v57 }
 0x24a   : > { %v628_v61 = vsel %vm625_vm14, %v627_v58, %v623_v59  ;;  %vm637_vm1 = vmor %vm635_vm0, %vm636_vm15 }
 0x24b   : > { %677 = vperm.xlu0 %901, %v628_v61   ;;  %v632_v62 = vsub.f32 1.0, %v631_v60 }
 0x24d   : > { %v633_v0 = vmul.f32 %v935_v57, %v632_v62 }
 0x24f   : > { %v634_v2 = vadd.f32 %v935_v57, %v633_v0 }
 0x251   : > { %v638_v4 = vsel %vm637_vm1, %v935_v57, %v634_v2 }
 0x252   : > { %v643_v5 = vsel %vm640_vm2, %v642_v3, %v638_v4 }
 0x253   : > { %682 = vperm.xlu1 %902, %v643_v5  }
 0x28d   : > { %v648_v6 = vpop.permute.xlu0 %647 }
 0x28e   : > { %v685_v7 = vmul.f32 %v648_v6, %v1217_v32  ;;  %v686_v8 = vmul.f32 %v648_v6, %v1220_v33 }
 0x290   : > { %701 = vst [vmem:[%s1356_s12] sm:$0xff] %v685_v7 }
 0x291   : > { %702 = vst [vmem:[%s1356_s12 + $0x8] sm:$0xff] %v686_v8 }
 0x295   : > { %v668_v9 = vpop.permute.xlu2 %667  ;;  %v653_v10 = vpop.permute.xlu0 %652 }
 0x296   : > { %v693_v11 = vmul.f32 %v668_v9, %v1269_v43  ;;  %v694_v32 = vmul.f32 %v668_v9, %v1272_v44  ;;  %v687_v33 = vmul.f32 %v653_v10, %v1233_v35  ;;  %v688_v12 = vmul.f32 %v653_v10, %v1236_v36 }
 0x298   : > { %709 = vst [vmem:[%s1356_s12 + $0x40] sm:$0xff] %v693_v11 }
 0x299   : > { %710 = vst [vmem:[%s1356_s12 + $0x48] sm:$0xff] %v694_v32 }
 0x29a   : > { %703 = vst [vmem:[%s1356_s12 + $0x10] sm:$0xff] %v687_v33 }
 0x29b   : > { %704 = vst [vmem:[%s1356_s12 + $0x18] sm:$0xff] %v688_v12 }
 0x29d   : > { %v673_v13 = vpop.permute.xlu2 %672  ;;  %v658_v14 = vpop.permute.xlu1 %657 }
 0x29e   : > { %v695_v15 = vmul.f32 %v673_v13, %v1281_v46  ;;  %v696_v43 = vmul.f32 %v673_v13, %v1284_v47  ;;  %v689_v44 = vmul.f32 %v658_v14, %v1249_v38  ;;  %v690_v35 = vmul.f32 %v658_v14, %v1252_v39 }
 0x2a0   : > { %711 = vst [vmem:[%s1356_s12 + $0x50] sm:$0xff] %v695_v15 }
 0x2a1   : > { %712 = vst [vmem:[%s1356_s12 + $0x58] sm:$0xff] %v696_v43 }
 0x2a2   : > { %705 = vst [vmem:[%s1356_s12 + $0x20] sm:$0xff] %v689_v44 }
 0x2a3   : > { %706 = vst [vmem:[%s1356_s12 + $0x28] sm:$0xff] %v690_v35 }
 0x2a5   : > { %v663_v36 = vpop.permute.xlu1 %662 }
 0x2a6   : > { %v691_v16 = vmul.f32 %v663_v36, %v1258_v40  ;;  %v692_v17 = vmul.f32 %v663_v36, %v1261_v41 }
 0x2a8   : > { %707 = vst [vmem:[%s1356_s12 + $0x30] sm:$0xff] %v691_v16 }
 0x2a9   : > { %708 = vst [vmem:[%s1356_s12 + $0x38] sm:$0xff] %v692_v17 }
 0x2bd   : > { %v678_v46 = vpop.permute.xlu0 %677 }
 0x2be   : > { %v697_v38 = vmul.f32 %v678_v46, %v1224_v34  ;;  %v698_v39 = vmul.f32 %v678_v46, %v1266_v42 }
 0x2c0   : > { %713 = vst [vmem:[%s1356_s12 + $0x60] sm:$0xff] %v697_v38 }
 0x2c1   : > { %714 = vst [vmem:[%s1356_s12 + $0x68] sm:$0xff] %v698_v39 }
 0x2c5   : > { %v683_v40 = vpop.permute.xlu1 %682 }
 0x2c6   : > { %v699_v41 = vmul.f32 %v683_v40, %v1240_v37  ;;  %v700_v47 = vmul.f32 %v683_v40, %v1278_v45 }
 0x2c8   : > { %715 = vst [vmem:[%s1356_s12 + $0x70] sm:$0xff] %v699_v41 }
 0x2c9   : > { %716 = vst [vmem:[%s1356_s12 + $0x78] sm:$0xff] %v700_v47 }
 0x2ca   : > { %963 = shalt.err (!%p960_p3)
}
 0x2cb   : > { %s1001_s9 = smov 256   ;;  %s1002_s12 = smov 16  }
 0x2cc   : > { %859 = dma.vmem_to_hbm [thread:$0]  (%p1076_p5), %s731_s16, 2048, %s733_s17, %s718_s25, %s1001_s9, %s1001_s9, %s1002_s12  }
 0x2cd PF: > { %p865_p4 = scmp.ge.s32.totalorder %s998_s24, 2  ;;  %s747_s13 = sand.u32 1, %s986_s21  }
 0x2ce   : > { %s748_s10 = scalar_lea.sflag [#allocation3], %s747_s13 }
 0x2cf   : > { %p862_p7 = pnand %p865_p4, %p1080_p6 }
 0x2d1   : > { %p863_p8 = pneg %p862_p7 }
 0x2d3   : > { %981 = dma.done.wait (%p863_p8), %s748_s10, 2048  }
 0x2d4   : > { %983 = vsyncadd (%p863_p8), %s748_s10, 4294965248  ;;  %p16_p9 = scmp.ge.s32.totalorder %s1063_s27, 4   ;;  %s1431_s21 = smov %s990_s22 }
 0x2d5   : > { %s1432_s22 = smov %s994_s23  ;;  %s1433_s23 = smov %s1074_s30 }
 0x2d6   : > { %s1434_s24 = smov %s1063_s27  ;;  %18 = sbr.rel (!%p16_p9) target bundleno = 3 (0x3), region = 79 }
 0x2db   :  { %754 = vsyncpa [#allocation3], 1 }
 0x2dc   :  { %756 = vsyncpa [#allocation3 + $0x1], 1 }

</bundles_post_ra>
